<compile_context>
chip_gen: v7x
topology: tpu7x:2x2x1
jax: 0.10.0
libtpu: 0.0.40
codegen_flags: <defaults>
</compile_context>

<pallas_src>
import functools

import jax
import jax.numpy as jnp
from jax.experimental import pallas as pl
from jax.experimental.pallas import tpu as pltpu


# ---------------------------------------------------------------------------
# Fallback H-sum (roll tree).  Only used when the MXU selector matrix would
# not fit in VMEM.  Exact in f32.
# ---------------------------------------------------------------------------
def _orbit_sum(v, *, step, period, axis):
    """For every index p along `axis`: sum_{j<period} v[..., (p + j*step) % size].

    With size == step*period this is the sum over all positions sharing p's
    residue mod `step`, broadcast back to every position of the orbit, i.e.
    "sum over H, broadcast back over H" when `axis` is the flattened (H, W).
    Implemented as ~2*log2(period) circular rolls (XLU) + adds (VPU).
    """
    axis = axis % v.ndim              # pltpu.roll requires a non-negative axis
    size = v.shape[axis]
    result = None
    covered = 0                       # shifts already folded into `result`
    chunk = v                         # running sum of `span` consecutive shifts
    span = 1
    rem = period
    while rem:
        if rem & 1:
            sh = (covered * step) % size
            contrib = chunk if sh == 0 else pltpu.roll(chunk, shift=sh, axis=axis)
            result = contrib if result is None else result + contrib
            covered += span
        rem >>= 1
        if rem:
            sh = (span * step) % size
            rolled = chunk if sh == 0 else pltpu.roll(chunk, shift=sh, axis=axis)
            chunk = chunk + rolled
            span *= 2
    return result


# ---------------------------------------------------------------------------
# Kernel
# ---------------------------------------------------------------------------
def _pooling_maps_kernel(*refs, n_out, n_slices, spatial_w, use_selector):
    """One grid step == one tile of bt batch elements.

    Layouts (channels on the leading looped axis, batch on sublanes, the
    flattened H*W on lanes):
      x_ref:    (n_in,  bt, H*W)   VMEM
      sel_ref:  (H*W, H*W)         VMEM   [only when use_selector]
      mask_ref: (bt, H*W)          VMEM
      out_ref:  (n_out, bt, H*W)   VMEM
    """
    if use_selector:
        x_ref, sel_ref, mask_ref, out_ref = refs
    else:
        x_ref, mask_ref, out_ref = refs
        sel_ref = None

    _, bt, hw = x_ref.shape

    logm = jnp.log(mask_ref[...].astype(jnp.float32))            # (bt, hw)
    sel = sel_ref[...] if use_selector else None                 # (hw, hw) 0/1

    def hsum(u):
        # For every flattened position p, sum u over all positions with the
        # same column p % W: the reference's sum over H, re-broadcast over H.
        if use_selector:
            return jnp.dot(u, sel, preferred_element_type=jnp.float32)   # MXU
        return _orbit_sum(u, step=spatial_w, period=hw // spatial_w, axis=1)

    # Per-slice softmax weights and c maps (n_slices is tiny).
    # TODO(synk): switch the static unrolls below to lax.fori_loop(...,
    # unroll=True) if n_slices / n_out ever grow large, so per-iteration
    # temporaries do not all stay live at once.
    b_sms = []
    cs = []
    for si in range(n_slices):
        b = x_ref[n_out + si].astype(jnp.float32) + logm         # (bt, hw)
        m = jnp.max(b, axis=-1, keepdims=True)                   # lane reduce
        e = jnp.exp(b - m)
        denom = jnp.sum(e, axis=-1, keepdims=True)
        # approx=False keeps the softmax within the reference tolerance.
        b_sms.append(e * pl.reciprocal(denom, approx=False))     # (bt, hw)
        cs.append(x_ref[n_out + n_slices + si].astype(jnp.float32))

    for o in range(n_out):
        a_o = x_ref[o].astype(jnp.float32)                       # (bt, hw)
        acc = jnp.zeros((bt, hw), jnp.float32)
        for si in range(n_slices):
            u = a_o * b_sms[si]                                  # (bt, hw)
            acc = acc + hsum(u) * cs[si]
        out_ref[o] = acc.astype(out_ref.dtype)                   # lane-dense store


# ---------------------------------------------------------------------------
# Tiling / VMEM heuristics
# ---------------------------------------------------------------------------
def _vmem_params():
    """Returns (budget_bytes, vmem_limit_bytes, want_two_grid_steps)."""
    try:
        cap = int(pltpu.get_tpu_info().vmem_capacity_bytes)
    except Exception:
        cap = None
    if cap is not None and cap >= 96 * 1024 * 1024:
        # v5e / v6e: 128 MiB VMEM, single TensorCore -> big tiles, no split.
        return 24 * 1024 * 1024, 96 * 1024 * 1024, False
    if cap is not None:
        # v7x-class: 64 MiB VMEM, two TensorCores -> headroom + >= 2 steps.
        return 10 * 1024 * 1024, 40 * 1024 * 1024, True
    # Unknown backend (e.g. interpret mode): conservative, no forced split.
    return 8 * 1024 * 1024, 40 * 1024 * 1024, False


def _pick_batch_block(batch, per_b_bytes, fixed_bytes, budget_bytes, want_two_steps):
    """Largest layout-legal batch tile fitting the VMEM budget.

    Legal tiles: multiples of 8 that divide `batch` (sublane-dense blocks), or
    the full batch (block dim == array dim is always legal).
    """
    cands = [d for d in range(8, batch, 8) if batch % d == 0]
    cands.append(batch)
    avail = max(budget_bytes - fixed_bytes, per_b_bytes)
    fit = [d for d in cands if d * per_b_bytes <= avail]
    bt = max(fit) if fit else min(cands)
    if want_two_steps:
        two = [d for d in cands if batch // d >= 2]
        if two:
            bt = min(bt, max(two))   # keep both v7x TensorCores fed
    return int(bt)


# ---------------------------------------------------------------------------
# Public wrapper
# ---------------------------------------------------------------------------
def pooling_maps(x, mask=None, *, n_slices, batch_block=None,
                 selector_bytes_max=8 * 1024 * 1024):
    """Pallas implementation of PoolingMaps.forward (n_dim == 2)."""
    B, n_in, H, W = x.shape
    n_out = n_in - 2 * n_slices
    assert n_out > 0 and n_slices > 0
    hw = H * W

    if mask is None:
        mask = jnp.ones((B, H, W), dtype=x.dtype)

    # Channels off the sublane axis: x -> (n_in, B, hw), mask -> (B, hw).
    # (Wrapper-side layout plumbing; the kernel sees sublane/lane-dense slabs.)
    xt = jnp.transpose(x.reshape(B, n_in, hw), (1, 0, 2))
    mf = mask.reshape(B, hw)

    # 0/1 column selector for the MXU H-sum: sel[q, p] = 1 iff q % W == p % W.
    use_selector = hw * hw * 4 <= selector_bytes_max
    sel = None
    if use_selector:
        col = jnp.arange(hw, dtype=jnp.int32) % W
        sel = (col[:, None] == col[None, :]).astype(jnp.float32)      # (hw, hw)

    budget, vmem_limit, want_two_steps = _vmem_params()
    itemsize = x.dtype.itemsize
    # Per-batch-element VMEM: double-buffered x/out/mask blocks + f32 live
    # temporaries of the kernel body, with a 1.3x safety factor.
    per_b = int(1.3 * (2 * (n_in + n_out + 1) * hw * itemsize
                       + (2 * n_slices + 6) * hw * 4))
    fixed = (2 * hw * hw * 4) if use_selector else 0   # double-buffered selector
    if batch_block is None:
        bt = _pick_batch_block(B, per_b, fixed, budget, want_two_steps)
    else:
        bt = int(batch_block)
    assert B % bt == 0

    kernel = functools.partial(_pooling_maps_kernel, n_out=n_out,
                               n_slices=n_slices, spatial_w=W,
                               use_selector=use_selector)

    in_specs = [pl.BlockSpec((n_in, bt, hw), lambda i: (0, i, 0))]
    inputs = [xt]
    if use_selector:
        in_specs.append(pl.BlockSpec((hw, hw), lambda i: (0, 0)))
        inputs.append(sel)
    in_specs.append(pl.BlockSpec((bt, hw), lambda i: (i, 0)))
    inputs.append(mf)

    # Advisory cost estimate so XLA can schedule around this kernel.
    matmul_flops = 2 * hw * hw if use_selector else 0
    flops = B * n_slices * (n_out * (matmul_flops + 3 * hw) + 5 * hw)
    transcendentals = B * (n_slices + 1) * hw
    bytes_accessed = (xt.size * itemsize + mf.size * mf.dtype.itemsize
                      + (sel.size * 4 if use_selector else 0)
                      + B * n_out * hw * itemsize)

    out_t = pl.pallas_call(
        kernel,
        out_shape=jax.ShapeDtypeStruct((n_out, B, hw), x.dtype),
        grid_spec=pltpu.PrefetchScalarGridSpec(
            num_scalar_prefetch=0,
            grid=(B // bt,),
            in_specs=in_specs,
            out_specs=pl.BlockSpec((n_out, bt, hw), lambda i: (0, i, 0)),
        ),
        compiler_params=pltpu.CompilerParams(
            dimension_semantics=("parallel",),
            vmem_limit_bytes=int(vmem_limit),
        ),
        cost_estimate=pl.CostEstimate(
            flops=int(flops),
            transcendentals=int(transcendentals),
            bytes_accessed=int(bytes_accessed),
        ),
    )(*inputs)

    return jnp.transpose(out_t, (1, 0, 2)).reshape(B, n_out, H, W)


# ---------------------------------------------------------------------------
# Pure-JAX reference (mirrors the PyTorch code line-by-line)
# ---------------------------------------------------------------------------
def pooling_maps_ref(x, mask, *, n_slices):
    n_in = x.shape[1]
    n_out = n_in - 2 * n_slices
    a = x[:, :n_out]
    b = x[:, n_out:n_in - n_slices]
    c = x[:, n_in - n_slices:]
    b = b + jnp.log(mask[:, None, :, :].astype(jnp.float32))
    B, S, H, W = b.shape
    b = jax.nn.softmax(b.reshape(B, S, -1), axis=2).reshape(B, S, H, W)
    tmp = a[:, None] * b[:, :, None]                 # (B, S, n_out, H, W)
    tmp = jnp.sum(tmp, axis=3, keepdims=True)        # (B, S, n_out, 1, W)
    tmp = tmp * c[:, :, None]                        # (B, S, n_out, H, W)
    return jnp.sum(tmp, axis=1)                      # (B, n_out, H, W)


if __name__ == "__main__":
    # n_dim=2, n_slices=2, n_in = n_out + 2*n_slices = 4 + 4 = 8.
    B, n_in, H, W = 2, 8, 16, 16
    n_slices = 2

    key = jax.random.PRNGKey(0)
    kx, km = jax.random.split(key)
    x = jax.random.normal(kx, (B, n_in, H, W), dtype=jnp.float32)
    mask = jax.random.bernoulli(km, p=0.8, shape=(B, H, W)).astype(jnp.float32)

    out = pooling_maps(x, mask, n_slices=n_slices)
    out = jax.block_until_ready(out)

    ref = pooling_maps_ref(x, mask, n_slices=n_slices)
    assert out.shape == (B, n_in - 2 * n_slices, H, W)
    max_err = float(jnp.max(jnp.abs(out - ref)))
    assert jnp.allclose(out, ref, atol=1e-4, rtol=1e-4), max_err

    print("KERNEL_OK")
</pallas_src>

<mosaic_0001>
module attributes {stable_mosaic.version = 11 : i64} {
  func.func @_pooling_maps_kernel(%arg0: i32, %arg1: memref<8x2x256xf32, #tpu.memory_space<vmem>>, %arg2: memref<256x256xf32, #tpu.memory_space<vmem>>, %arg3: memref<2x256xf32, #tpu.memory_space<vmem>>, %arg4: memref<4x2x256xf32, #tpu.memory_space<vmem>>) attributes {dimension_semantics = [#tpu.dimension_semantics<parallel>], iteration_bounds = array<i64: 1>, scalar_prefetch = 0 : i64, scratch_operands = 0 : i64, tpu.core_type = #tpu.core_type<tc>, window_params = [{transform_indices = @transform_0, window_bounds = array<i64: 8, 2, 256>}, {pipeline_mode = #tpu.pipeline_mode<synchronous>, transform_indices = @transform_1, window_bounds = array<i64: 256, 256>}, {transform_indices = @transform_2, window_bounds = array<i64: 2, 256>}, {transform_indices = @transform_3, window_bounds = array<i64: 4, 2, 256>}]} {
    %c0 = arith.constant 0 : index
    %c0_0 = arith.constant 0 : index
    %0 = vector.load %arg3[%c0, %c0_0] : memref<2x256xf32, #tpu.memory_space<vmem>>, vector<2x256xf32>
    %1 = math.log %0 : vector<2x256xf32>
    %c0_1 = arith.constant 0 : index
    %c0_2 = arith.constant 0 : index
    %2 = vector.load %arg2[%c0_1, %c0_2] : memref<256x256xf32, #tpu.memory_space<vmem>>, vector<256x256xf32>
    %c4 = arith.constant 4 : index
    %c0_3 = arith.constant 0 : index
    %c0_4 = arith.constant 0 : index
    %3 = vector.load %arg1[%c4, %c0_3, %c0_4] : memref<8x2x256xf32, #tpu.memory_space<vmem>>, vector<1x2x256xf32>
    %4 = vector.shape_cast %3 : vector<1x2x256xf32> to vector<2x256xf32>
    %5 = arith.addf %4, %1 : vector<2x256xf32>
    %cst = arith.constant dense<0xFF800000> : vector<2xf32>
    %6 = vector.multi_reduction <maximumf>, %5, %cst [1] : vector<2x256xf32> to vector<2xf32>
    %7 = vector.shape_cast %6 : vector<2xf32> to vector<2x1xf32>
    %8 = vector.broadcast %7 : vector<2x1xf32> to vector<2x256xf32>
    %9 = arith.subf %5, %8 : vector<2x256xf32>
    %10 = math.exp %9 : vector<2x256xf32>
    %cst_5 = arith.constant dense<0.000000e+00> : vector<2xf32>
    %11 = vector.multi_reduction <add>, %10, %cst_5 [1] : vector<2x256xf32> to vector<2xf32>
    %12 = vector.shape_cast %11 : vector<2xf32> to vector<2x1xf32>
    %13 = tpu.reciprocal %12 : vector<2x1xf32> -> vector<2x1xf32>
    %14 = vector.broadcast %13 : vector<2x1xf32> to vector<2x256xf32>
    %15 = arith.mulf %10, %14 : vector<2x256xf32>
    %c6 = arith.constant 6 : index
    %c0_6 = arith.constant 0 : index
    %c0_7 = arith.constant 0 : index
    %16 = vector.load %arg1[%c6, %c0_6, %c0_7] : memref<8x2x256xf32, #tpu.memory_space<vmem>>, vector<1x2x256xf32>
    %17 = vector.shape_cast %16 : vector<1x2x256xf32> to vector<2x256xf32>
    %c5 = arith.constant 5 : index
    %c0_8 = arith.constant 0 : index
    %c0_9 = arith.constant 0 : index
    %18 = vector.load %arg1[%c5, %c0_8, %c0_9] : memref<8x2x256xf32, #tpu.memory_space<vmem>>, vector<1x2x256xf32>
    %19 = vector.shape_cast %18 : vector<1x2x256xf32> to vector<2x256xf32>
    %20 = arith.addf %19, %1 : vector<2x256xf32>
    %cst_10 = arith.constant dense<0xFF800000> : vector<2xf32>
    %21 = vector.multi_reduction <maximumf>, %20, %cst_10 [1] : vector<2x256xf32> to vector<2xf32>
    %22 = vector.shape_cast %21 : vector<2xf32> to vector<2x1xf32>
    %23 = vector.broadcast %22 : vector<2x1xf32> to vector<2x256xf32>
    %24 = arith.subf %20, %23 : vector<2x256xf32>
    %25 = math.exp %24 : vector<2x256xf32>
    %cst_11 = arith.constant dense<0.000000e+00> : vector<2xf32>
    %26 = vector.multi_reduction <add>, %25, %cst_11 [1] : vector<2x256xf32> to vector<2xf32>
    %27 = vector.shape_cast %26 : vector<2xf32> to vector<2x1xf32>
    %28 = tpu.reciprocal %27 : vector<2x1xf32> -> vector<2x1xf32>
    %29 = vector.broadcast %28 : vector<2x1xf32> to vector<2x256xf32>
    %30 = arith.mulf %25, %29 : vector<2x256xf32>
    %c7 = arith.constant 7 : index
    %c0_12 = arith.constant 0 : index
    %c0_13 = arith.constant 0 : index
    %31 = vector.load %arg1[%c7, %c0_12, %c0_13] : memref<8x2x256xf32, #tpu.memory_space<vmem>>, vector<1x2x256xf32>
    %32 = vector.shape_cast %31 : vector<1x2x256xf32> to vector<2x256xf32>
    %c0_14 = arith.constant 0 : index
    %c0_15 = arith.constant 0 : index
    %c0_16 = arith.constant 0 : index
    %33 = vector.load %arg1[%c0_14, %c0_15, %c0_16] : memref<8x2x256xf32, #tpu.memory_space<vmem>>, vector<1x2x256xf32>
    %34 = vector.shape_cast %33 : vector<1x2x256xf32> to vector<2x256xf32>
    %cst_17 = arith.constant 0.000000e+00 : f32
    %35 = vector.broadcast %cst_17 : f32 to vector<2x256xf32>
    %36 = arith.mulf %34, %15 : vector<2x256xf32>
    %cst_18 = arith.constant dense<0.000000e+00> : vector<2x256xf32>
    %37 = tpu.matmul %36, %2, %cst_18 {dimension_numbers = #tpu.dot_dimension_numbers<[1], [0], [0], [1], [0, 0, 1, 1], [], []>} : vector<2x256xf32>, vector<256x256xf32>, vector<2x256xf32> -> vector<2x256xf32>
    %38 = arith.mulf %37, %17 : vector<2x256xf32>
    %39 = arith.addf %35, %38 : vector<2x256xf32>
    %40 = arith.mulf %34, %30 : vector<2x256xf32>
    %cst_19 = arith.constant dense<0.000000e+00> : vector<2x256xf32>
    %41 = tpu.matmul %40, %2, %cst_19 {dimension_numbers = #tpu.dot_dimension_numbers<[1], [0], [0], [1], [0, 0, 1, 1], [], []>} : vector<2x256xf32>, vector<256x256xf32>, vector<2x256xf32> -> vector<2x256xf32>
    %42 = arith.mulf %41, %32 : vector<2x256xf32>
    %43 = arith.addf %39, %42 : vector<2x256xf32>
    %c0_20 = arith.constant 0 : index
    %c0_21 = arith.constant 0 : index
    %c0_22 = arith.constant 0 : index
    %44 = vector.load %arg4[%c0_20, %c0_21, %c0_22] : memref<4x2x256xf32, #tpu.memory_space<vmem>>, vector<1x2x256xf32>
    %45 = vector.shape_cast %44 : vector<1x2x256xf32> to vector<2x256xf32>
    %46 = vector.shape_cast %43 : vector<2x256xf32> to vector<1x2x256xf32>
    tpu.vector_store %arg4[%c0_20, %c0_21, %c0_22], %46 {strides = array<i32>} : memref<4x2x256xf32, #tpu.memory_space<vmem>>, vector<1x2x256xf32>,
    %c1 = arith.constant 1 : index
    %c0_23 = arith.constant 0 : index
    %c0_24 = arith.constant 0 : index
    %47 = vector.load %arg1[%c1, %c0_23, %c0_24] : memref<8x2x256xf32, #tpu.memory_space<vmem>>, vector<1x2x256xf32>
    %48 = vector.shape_cast %47 : vector<1x2x256xf32> to vector<2x256xf32>
    %cst_25 = arith.constant 0.000000e+00 : f32
    %49 = vector.broadcast %cst_25 : f32 to vector<2x256xf32>
    %50 = arith.mulf %48, %15 : vector<2x256xf32>
    %cst_26 = arith.constant dense<0.000000e+00> : vector<2x256xf32>
    %51 = tpu.matmul %50, %2, %cst_26 {dimension_numbers = #tpu.dot_dimension_numbers<[1], [0], [0], [1], [0, 0, 1, 1], [], []>} : vector<2x256xf32>, vector<256x256xf32>, vector<2x256xf32> -> vector<2x256xf32>
    %52 = arith.mulf %51, %17 : vector<2x256xf32>
    %53 = arith.addf %49, %52 : vector<2x256xf32>
    %54 = arith.mulf %48, %30 : vector<2x256xf32>
    %cst_27 = arith.constant dense<0.000000e+00> : vector<2x256xf32>
    %55 = tpu.matmul %54, %2, %cst_27 {dimension_numbers = #tpu.dot_dimension_numbers<[1], [0], [0], [1], [0, 0, 1, 1], [], []>} : vector<2x256xf32>, vector<256x256xf32>, vector<2x256xf32> -> vector<2x256xf32>
    %56 = arith.mulf %55, %32 : vector<2x256xf32>
    %57 = arith.addf %53, %56 : vector<2x256xf32>
    %c1_28 = arith.constant 1 : index
    %c0_29 = arith.constant 0 : index
    %c0_30 = arith.constant 0 : index
    %58 = vector.load %arg4[%c1_28, %c0_29, %c0_30] : memref<4x2x256xf32, #tpu.memory_space<vmem>>, vector<1x2x256xf32>
    %59 = vector.shape_cast %58 : vector<1x2x256xf32> to vector<2x256xf32>
    %60 = vector.shape_cast %57 : vector<2x256xf32> to vector<1x2x256xf32>
    tpu.vector_store %arg4[%c1_28, %c0_29, %c0_30], %60 {strides = array<i32>} : memref<4x2x256xf32, #tpu.memory_space<vmem>>, vector<1x2x256xf32>,
    %c2 = arith.constant 2 : index
    %c0_31 = arith.constant 0 : index
    %c0_32 = arith.constant 0 : index
    %61 = vector.load %arg1[%c2, %c0_31, %c0_32] : memref<8x2x256xf32, #tpu.memory_space<vmem>>, vector<1x2x256xf32>
    %62 = vector.shape_cast %61 : vector<1x2x256xf32> to vector<2x256xf32>
    %cst_33 = arith.constant 0.000000e+00 : f32
    %63 = vector.broadcast %cst_33 : f32 to vector<2x256xf32>
    %64 = arith.mulf %62, %15 : vector<2x256xf32>
    %cst_34 = arith.constant dense<0.000000e+00> : vector<2x256xf32>
    %65 = tpu.matmul %64, %2, %cst_34 {dimension_numbers = #tpu.dot_dimension_numbers<[1], [0], [0], [1], [0, 0, 1, 1], [], []>} : vector<2x256xf32>, vector<256x256xf32>, vector<2x256xf32> -> vector<2x256xf32>
    %66 = arith.mulf %65, %17 : vector<2x256xf32>
    %67 = arith.addf %63, %66 : vector<2x256xf32>
    %68 = arith.mulf %62, %30 : vector<2x256xf32>
    %cst_35 = arith.constant dense<0.000000e+00> : vector<2x256xf32>
    %69 = tpu.matmul %68, %2, %cst_35 {dimension_numbers = #tpu.dot_dimension_numbers<[1], [0], [0], [1], [0, 0, 1, 1], [], []>} : vector<2x256xf32>, vector<256x256xf32>, vector<2x256xf32> -> vector<2x256xf32>
    %70 = arith.mulf %69, %32 : vector<2x256xf32>
    %71 = arith.addf %67, %70 : vector<2x256xf32>
    %c2_36 = arith.constant 2 : index
    %c0_37 = arith.constant 0 : index
    %c0_38 = arith.constant 0 : index
    %72 = vector.load %arg4[%c2_36, %c0_37, %c0_38] : memref<4x2x256xf32, #tpu.memory_space<vmem>>, vector<1x2x256xf32>
    %73 = vector.shape_cast %72 : vector<1x2x256xf32> to vector<2x256xf32>
    %74 = vector.shape_cast %71 : vector<2x256xf32> to vector<1x2x256xf32>
    tpu.vector_store %arg4[%c2_36, %c0_37, %c0_38], %74 {strides = array<i32>} : memref<4x2x256xf32, #tpu.memory_space<vmem>>, vector<1x2x256xf32>,
    %c3 = arith.constant 3 : index
    %c0_39 = arith.constant 0 : index
    %c0_40 = arith.constant 0 : index
    %75 = vector.load %arg1[%c3, %c0_39, %c0_40] : memref<8x2x256xf32, #tpu.memory_space<vmem>>, vector<1x2x256xf32>
    %76 = vector.shape_cast %75 : vector<1x2x256xf32> to vector<2x256xf32>
    %cst_41 = arith.constant 0.000000e+00 : f32
    %77 = vector.broadcast %cst_41 : f32 to vector<2x256xf32>
    %78 = arith.mulf %76, %15 : vector<2x256xf32>
    %cst_42 = arith.constant dense<0.000000e+00> : vector<2x256xf32>
    %79 = tpu.matmul %78, %2, %cst_42 {dimension_numbers = #tpu.dot_dimension_numbers<[1], [0], [0], [1], [0, 0, 1, 1], [], []>} : vector<2x256xf32>, vector<256x256xf32>, vector<2x256xf32> -> vector<2x256xf32>
    %80 = arith.mulf %79, %17 : vector<2x256xf32>
    %81 = arith.addf %77, %80 : vector<2x256xf32>
    %82 = arith.mulf %76, %30 : vector<2x256xf32>
    %cst_43 = arith.constant dense<0.000000e+00> : vector<2x256xf32>
    %83 = tpu.matmul %82, %2, %cst_43 {dimension_numbers = #tpu.dot_dimension_numbers<[1], [0], [0], [1], [0, 0, 1, 1], [], []>} : vector<2x256xf32>, vector<256x256xf32>, vector<2x256xf32> -> vector<2x256xf32>
    %84 = arith.mulf %83, %32 : vector<2x256xf32>
    %85 = arith.addf %81, %84 : vector<2x256xf32>
    %c3_44 = arith.constant 3 : index
    %c0_45 = arith.constant 0 : index
    %c0_46 = arith.constant 0 : index
    %86 = vector.load %arg4[%c3_44, %c0_45, %c0_46] : memref<4x2x256xf32, #tpu.memory_space<vmem>>, vector<1x2x256xf32>
    %87 = vector.shape_cast %86 : vector<1x2x256xf32> to vector<2x256xf32>
    %88 = vector.shape_cast %85 : vector<2x256xf32> to vector<1x2x256xf32>
    tpu.vector_store %arg4[%c3_44, %c0_45, %c0_46], %88 {strides = array<i32>} : memref<4x2x256xf32, #tpu.memory_space<vmem>>, vector<1x2x256xf32>,
    return
  }
  func.func @transform_0(%arg0: i32) -> (i32, i32, i32) {
    %c0_i32 = arith.constant 0 : i32
    %c0_i32_0 = arith.constant 0 : i32
    %c0_i32_1 = arith.constant 0 : i32
    return %c0_i32, %arg0, %c0_i32_0 : i32, i32, i32
  }
  func.func @transform_1(%arg0: i32) -> (i32, i32) {
    %c0_i32 = arith.constant 0 : i32
    %c0_i32_0 = arith.constant 0 : i32
    %c0_i32_1 = arith.constant 0 : i32
    return %c0_i32, %c0_i32_0 : i32, i32
  }
  func.func @transform_2(%arg0: i32) -> (i32, i32) {
    %c0_i32 = arith.constant 0 : i32
    %c0_i32_0 = arith.constant 0 : i32
    return %arg0, %c0_i32 : i32, i32
  }
  func.func @transform_3(%arg0: i32) -> (i32, i32, i32) {
    %c0_i32 = arith.constant 0 : i32
    %c0_i32_0 = arith.constant 0 : i32
    %c0_i32_1 = arith.constant 0 : i32
    return %c0_i32, %arg0, %c0_i32_0 : i32, i32, i32
  }
}

</mosaic_0001>

<bundles_post_ra>
// kernel: tpu_custom_call.1
= control target key start
LH: loop header
LB: loop body
LE: loop exit
PB: predicated region body
PF: predicated region fallthrough
CT: control target
= control target key end

     0   :  { %8 = vsyncpa [#allocation3], 0  ;;  %s2118_s0 = inlined_call_operand.hbm [shape: f32[8,2,256], index: 0, kind: input, shape index: {}]   ;;  %s2119_s1 = inlined_call_operand.hbm [shape: f32[256,256], index: 1, kind: input, shape index: {}]   ;;  %s2120_s2 = inlined_call_operand.vmem [shape: f32[2,256], index: 2, kind: input, shape index: {}]   ;;  %s2121_s3 = inlined_call_operand.hbm [shape: f32[4,2,256], index: 3, kind: output, shape index: {}]  }
   0x1   :  { %9 = vsyncpa [#allocation6], 0 }
   0x2   :  { %10 = vsyncpa [#allocation4], 0  ;;  %s1634_s12 = smov [#allocation2]   ;;  %s1562_s16 = scalar_lea.hbm %s2118_s0, 512 }
   0x3   :  { %s16_s13 = sshll.u32 %s1634_s12, 4  ;;  %p1563_p0 = scmp.ne.s32.totalorder %s2118_s0, %s1562_s16  ;;  %s17_s13 = int_to_ptr.vmem [resolvable:$true] %s16_s13 }
   0x4   :  { %p1566_p1 = scmp.lt.u32.totalorder %s1562_s16, %s2118_s0 }
   0x6   :  { %p1568_p2 = pnand %p1566_p1, %p1563_p0 }
   0x8   :  { %1571 = shalt.err (!%p1568_p2)
}
   0x9   :  { %s1572_s21 = scalar_lea.vmem %s17_s13, 512  ;;  %p1577_p4 = scmp.lt.s32.totalorder %s17_s13, %s17_s13 }
   0xa   :  { %p1573_p3 = scmp.ne.s32.totalorder %s17_s13, %s1572_s21  ;;  %p1578_p5 = scmp.lt.s32.totalorder %s1572_s21, %s1572_s21 }
   0xc   :  { %p1579_p6 = por %p1578_p5, %p1577_p4 }
   0xe   :  { %p1580_p7 = pnand %p1579_p6, %p1573_p3 }
  0x10   :  { %1583 = shalt.err (!%p1580_p7)
}
  0x11   :  { %s1635_s22 = smov 64   ;;  %s1636_s23 = smov 4  }
  0x12   :  { %22 = dma.hbm_to_vmem [thread:$0]  %s2118_s0, 512, %s17_s13, [#allocation3], %s1635_s22, %s1635_s22, %s1636_s23  }
  0x13   :  { %s1637_s26 = smov [#allocation5]   ;;  %s1584_s30 = scalar_lea.hbm %s2119_s1, 8192 }
  0x14   :  { %s28_s27 = sshll.u32 %s1637_s26, 4  ;;  %p1585_p8 = scmp.ne.s32.totalorder %s2119_s1, %s1584_s30  ;;  %s29_s27 = int_to_ptr.vmem [resolvable:$true] %s28_s27 }
  0x15   :  { %p1588_p9 = scmp.lt.u32.totalorder %s1584_s30, %s2119_s1 }
  0x17   :  { %p1590_p10 = pnand %p1588_p9, %p1585_p8 }
  0x19   :  { %1593 = shalt.err (!%p1590_p10)
}
  0x1a   :  { %s1594_s8 = scalar_lea.vmem %s29_s27, 8192  ;;  %p1599_p12 = scmp.lt.s32.totalorder %s29_s27, %s29_s27 }
  0x1b   :  { %p1595_p11 = scmp.ne.s32.totalorder %s29_s27, %s1594_s8  ;;  %p1600_p13 = scmp.lt.s32.totalorder %s1594_s8, %s1594_s8 }
  0x1d   :  { %p1601_p0 = por %p1600_p13, %p1599_p12 }
  0x1f   :  { %p1602_p1 = pnand %p1601_p0, %p1595_p11 }
  0x21   :  { %1605 = shalt.err (!%p1602_p1)
}
  0x22   :  { %s1638_s0 = smov 256   ;;  %s1639_s9 = smov 16  }
  0x23   :  { %34 = dma.hbm_to_vmem [thread:$0]  %s2119_s1, 8192, %s29_s27, [#allocation6], %s1638_s0, %s1638_s0, %s1639_s9  }
  0x24   :  { %1628 = dma.done.wait [#allocation3], 512  }
  0x25   :  { %1629 = vsyncadd [#allocation3], 4294966784 }
  0x26   :  { %1630 = dma.done.wait [#allocation6], 8192  }
  0x27   :  { %1631 = vsyncadd [#allocation6], 4294959104  ;;  %v43_v0 = vld [vmem:[%s2120_s2] sm:$0xf]  ;;  %v1640_v1 = vmov 1983009808   ;;  %v117_v3 = vlaneseq }
  0x28   :  { %1552 = vlog2.f32 %v43_v0  ;;  %v115_v2 = vunpack.c.l.s4 %v1640_v1  ;;  %v111_v7 = vld [vmem:[#allocation2 + $0x10] sm:$0xf]  ;;  %v172_v8 = vld [vmem:[#allocation2 + $0x14] sm:$0xf]  ;;  %vm124_vm0 = vcmask 1041408   ;;  %v47_v23 = vld [vmem:[#allocation5 + $0x8] sm:$0xff] }
  0x29   :  { %v1693_v5 = vshrl.u32 %v117_v3, 7  ;;  %v49_v24 = vld [vmem:[#allocation5 + $0x18] sm:$0xff]  ;;  %v46_v25 = vld [vmem:[#allocation5] sm:$0xff]  ;;  %v48_v27 = vld [vmem:[#allocation5 + $0x10] sm:$0xff]  ;;  %s1642_s1 = smov [#allocation7]  }
  0x2a   :  { %v116_v4 = vunpack.c.0.s8 %v115_v2  ;;  %v1710_v26 = vpack.c.bf16 %v49_v24, %v47_v23  ;;  %v51_v28 = vld [vmem:[#allocation5 + $0x28] sm:$0xff]  ;;  %v53_v29 = vld [vmem:[#allocation5 + $0x38] sm:$0xff]  ;;  %v1712_v30 = vpack.c.bf16 %v48_v27, %v46_v25  ;;  %v50_v32 = vld [vmem:[#allocation5 + $0x20] sm:$0xff]  ;;  %s1012_s2 = sshll.u32 %s1642_s1, 4  ;;  %s1013_s2 = int_to_ptr.vmem [resolvable:$true] %s1012_s2 }
  0x2b   :  { %v1714_v31 = vpack.c.bf16 %v53_v29, %v51_v28  ;;  %v52_v33 = vld [vmem:[#allocation5 + $0x30] sm:$0xff]  ;;  %v55_v34 = vld [vmem:[#allocation5 + $0x48] sm:$0xff]  ;;  %v57_v35 = vld [vmem:[#allocation5 + $0x58] sm:$0xff]  ;;  %s1606_s14 = scalar_lea.vmem %s1013_s2, 256  ;;  %p1611_p3 = scmp.lt.s32.totalorder %s1013_s2, %s1013_s2 }
  0x2c   :  { %v1696_v10 = vsub.s32 %v116_v4, %v1693_v5  ;;  %1032 = vmatprep.subr.bf16.mxu0 %v1710_v26  ;;  %1096 = vmatprep.subr.bf16.mxu1 %v1710_v26  ;;  %v1719_v36 = vpack.c.bf16 %v52_v33, %v50_v32  ;;  %v1723_v37 = vpack.c.bf16 %v57_v35, %v55_v34  ;;  %v54_v38 = vld [vmem:[#allocation5 + $0x40] sm:$0xff]  ;;  %v56_v39 = vld [vmem:[#allocation5 + $0x50] sm:$0xff]  ;;  %v59_v40 = vld [vmem:[#allocation5 + $0x68] sm:$0xff]  ;;  %v1641_v32 = vmov 269488144   ;;  %p1607_p2 = scmp.ne.s32.totalorder %s1013_s2, %s1606_s14  ;;  %p1612_p4 = scmp.lt.s32.totalorder %s1606_s14, %s1606_s14 }
  0x2d   :  { %1034 = vmatpush1.bf16.msra.mxu0 %v1712_v30  ;;  %1098 = vmatpush1.bf16.msra.mxu1 %v1712_v30  ;;  %v61_v41 = vld [vmem:[#allocation5 + $0x78] sm:$0xff]  ;;  %v1727_v42 = vpack.c.bf16 %v56_v39, %v54_v38  ;;  %v58_v44 = vld [vmem:[#allocation5 + $0x60] sm:$0xff]  ;;  %v60_v45 = vld [vmem:[#allocation5 + $0x70] sm:$0xff]  ;;  %v132_v33 = vunpack.c.l.s4 %v1641_v32 }
  0x2e   :  { %1036 = vmatprep.subr.bf16.mxu0 %v1714_v31  ;;  %1100 = vmatprep.subr.bf16.mxu1 %v1714_v31  ;;  %v1731_v43 = vpack.c.bf16 %v61_v41, %v59_v40  ;;  %v63_v46 = vld [vmem:[#allocation5 + $0x88] sm:$0xff]  ;;  %v65_v47 = vld [vmem:[#allocation5 + $0x98] sm:$0xff]  ;;  %v1735_v48 = vpack.c.bf16 %v60_v45, %v58_v44  ;;  %v62_v50 = vld [vmem:[#allocation5 + $0x80] sm:$0xff]  ;;  %p1613_p5 = por %p1612_p4, %p1611_p3 }
  0x2f   :  { %v1739_v49 = vpack.c.bf16 %v65_v47, %v63_v46  ;;  %v64_v51 = vld [vmem:[#allocation5 + $0x90] sm:$0xff]  ;;  %v67_v52 = vld [vmem:[#allocation5 + $0xa8] sm:$0xff]  ;;  %v69_v53 = vld [vmem:[#allocation5 + $0xb8] sm:$0xff]  ;;  %v133_v34 = vunpack.c.0.s8 %v132_v33 }
  0x30   :  { %v1743_v54 = vpack.c.bf16 %v64_v51, %v62_v50  ;;  %v1747_v55 = vpack.c.bf16 %v69_v53, %v67_v52  ;;  %v66_v56 = vld [vmem:[#allocation5 + $0xa0] sm:$0xff]  ;;  %v68_v57 = vld [vmem:[#allocation5 + $0xb0] sm:$0xff]  ;;  %v71_v58 = vld [vmem:[#allocation5 + $0xc8] sm:$0xff]  ;;  %p1614_p6 = pnand %p1613_p5, %p1607_p2 }
  0x31   :  { %1038 = vmatpush1.bf16.msra.mxu0 %v1719_v36  ;;  %1102 = vmatpush1.bf16.msra.mxu1 %v1719_v36  ;;  %v73_v59 = vld [vmem:[#allocation5 + $0xd8] sm:$0xff]  ;;  %v1751_v60 = vpack.c.bf16 %v68_v57, %v66_v56  ;;  %v70_v62 = vld [vmem:[#allocation5 + $0xc0] sm:$0xff]  ;;  %v72_v63 = vld [vmem:[#allocation5 + $0xd0] sm:$0xff]  ;;  %v1799_v35 = vsub.s32 %v133_v34, %v1693_v5 }
  0x32   :  { %v1553_v6 = vpop.eup %1552  ;;  %1040 = vmatprep.subr.bf16.mxu0 %v1723_v37  ;;  %1104 = vmatprep.subr.bf16.mxu1 %v1723_v37  ;;  %v1755_v61 = vpack.c.bf16 %v73_v59, %v71_v58  ;;  %v75_v0 = vld [vmem:[#allocation5 + $0xe8] sm:$0xff]  ;;  %v77_v1 = vld [vmem:[#allocation5 + $0xf8] sm:$0xff]  ;;  %v1759_v2 = vpack.c.bf16 %v72_v63, %v70_v62  ;;  %v74_v4 = vld [vmem:[#allocation5 + $0xe0] sm:$0xff] }
  0x33   :  { %v45_v9 = vmul.f32 0.6931472, %v1553_v6  ;;  %v1763_v3 = vpack.c.bf16 %v77_v1, %v75_v0  ;;  %v76_v6 = vld [vmem:[#allocation5 + $0xf0] sm:$0xff]  ;;  %v89_v23 = vld [vmem:[#allocation5 + $0x158] sm:$0xff]  ;;  %v86_v27 = vld [vmem:[#allocation5 + $0x140] sm:$0xff] }
  0x34   :  { %v88_v28 = vld [vmem:[#allocation5 + $0x150] sm:$0xff]  ;;  %v91_v63 = vld [vmem:[#allocation5 + $0x168] sm:$0xff]  ;;  %v93_v0 = vld [vmem:[#allocation5 + $0x178] sm:$0xff] }
  0x35   :  { %v1698_v11 = vadd.f32 %v111_v7, %v45_v9  ;;  %v1700_v12 = vadd.f32 %v172_v8, %v45_v9  ;;  %1042 = vmatpush1.bf16.msra.mxu0 %v1727_v42  ;;  %1106 = vmatpush1.bf16.msra.mxu1 %v1727_v42  ;;  %v79_v7 = vld [vmem:[#allocation5 + $0x108] sm:$0xff]  ;;  %v81_v8 = vld [vmem:[#allocation5 + $0x118] sm:$0xff]  ;;  %v1767_v9 = vpack.c.bf16 %v76_v6, %v74_v4  ;;  %v90_v4 = vld [vmem:[#allocation5 + $0x160] sm:$0xff] }
  0x36   :  { %1044 = vmatprep.subr.bf16.mxu0 %v1731_v43  ;;  %1108 = vmatprep.subr.bf16.mxu1 %v1731_v43  ;;  %v1791_v29 = vpack.c.bf16 %v88_v28, %v86_v27  ;;  %v1817_v1 = vpack.c.bf16 %v93_v0, %v91_v63  ;;  %v92_v6 = vld [vmem:[#allocation5 + $0x170] sm:$0xff]  ;;  %v98_v27 = vld [vmem:[#allocation5 + $0x1a0] sm:$0xff]  ;;  %v103_v33 = vld [vmem:[#allocation5 + $0x1c8] sm:$0xff] }
  0x37   :  { %v120_v13 = vrot.slane %v1698_v11, %v1696_v10  ;;  %v181_v14 = vrot.slane %v1700_v12, %v1696_v10  ;;  %v100_v28 = vld [vmem:[#allocation5 + $0x1b0] sm:$0xff]  ;;  %v105_v34 = vld [vmem:[#allocation5 + $0x1d8] sm:$0xff] }
  0x38   :  { %v1835_v32 = vpack.c.bf16 %v100_v28, %v98_v27  ;;  %v630_v28 = vld [vmem:[#allocation2 + $0x8] sm:$0xf] }
  0x39   :  { %v121_v15 = vcombine.high %v120_v13, %v120_v13  ;;  %v125_v16 = vsel %vm124_vm0, %v120_v13, -inf  ;;  %v182_v17 = vcombine.high %v181_v14, %v181_v14  ;;  %v185_v19 = vsel %vm124_vm0, %v181_v14, -inf  ;;  %1046 = vmatpush1.bf16.msra.mxu0 %v1735_v48  ;;  %1110 = vmatpush1.bf16.msra.mxu1 %v1735_v48  ;;  %v78_v14 = vld [vmem:[#allocation5 + $0x100] sm:$0xff] }
  0x3a   :  { %1048 = vmatprep.subr.bf16.mxu0 %v1739_v49  ;;  %1112 = vmatprep.subr.bf16.mxu1 %v1739_v49  ;;  %v1771_v13 = vpack.c.bf16 %v81_v8, %v79_v7  ;;  %v1819_v7 = vpack.c.bf16 %v92_v6, %v90_v4  ;;  %v95_v8 = vld [vmem:[#allocation5 + $0x188] sm:$0xff] }
  0x3b   :  { %v126_v18 = vsel %vm124_vm0, %v121_v15, -inf  ;;  %v186_v20 = vsel %vm124_vm0, %v182_v17, -inf  ;;  %v80_v15 = vld [vmem:[#allocation5 + $0x110] sm:$0xff]  ;;  %v85_v17 = vld [vmem:[#allocation5 + $0x138] sm:$0xff] }
  0x3c   :  { %v127_v21 = vmax.f32 %v125_v16, %v126_v18  ;;  %v187_v22 = vmax.f32 %v185_v19, %v186_v20  ;;  %v83_v16 = vld [vmem:[#allocation5 + $0x128] sm:$0xff]  ;;  %v1775_v18 = vpack.c.bf16 %v80_v15, %v78_v14  ;;  %v82_v20 = vld [vmem:[#allocation5 + $0x120] sm:$0xff]  ;;  %v97_v14 = vld [vmem:[#allocation5 + $0x198] sm:$0xff] }
  0x3d   :  { %1050 = vmatpush1.bf16.msra.mxu0 %v1743_v54  ;;  %1114 = vmatpush1.bf16.msra.mxu1 %v1743_v54  ;;  %v1779_v19 = vpack.c.bf16 %v85_v17, %v83_v16  ;;  %v1825_v15 = vpack.c.bf16 %v97_v14, %v95_v8  ;;  %v94_v16 = vld [vmem:[#allocation5 + $0x180] sm:$0xff]  ;;  %v96_v17 = vld [vmem:[#allocation5 + $0x190] sm:$0xff] }
  0x3e   :  { %128 = vmax.xlane.f32.xlu0 %v127_v21  ;;  %1052 = vmatprep.subr.bf16.mxu0 %v1747_v55  ;;  %v84_v21 = vld [vmem:[#allocation5 + $0x130] sm:$0xff] }
  0x3f   :  { %1116 = vmatprep.subr.bf16.mxu1 %v1747_v55  ;;  %v1783_v24 = vpack.c.bf16 %v84_v21, %v82_v20  ;;  %v1827_v20 = vpack.c.bf16 %v96_v17, %v94_v16  ;;  %v99_v21 = vld [vmem:[#allocation5 + $0x1a8] sm:$0xff] }
  0x41   :  { %1054 = vmatpush1.bf16.msra.mxu0 %v1751_v60  ;;  %1118 = vmatpush1.bf16.msra.mxu1 %v1751_v60 }
  0x42   :  { %188 = vmax.xlane.f32.xlu0 %v187_v22  ;;  %1056 = vmatprep.subr.bf16.mxu0 %v1755_v61  ;;  %v87_v22 = vld [vmem:[#allocation5 + $0x148] sm:$0xff] }
  0x43   :  { %1120 = vmatprep.subr.bf16.mxu1 %v1755_v61  ;;  %v1787_v25 = vpack.c.bf16 %v89_v23, %v87_v22  ;;  %v101_v22 = vld [vmem:[#allocation5 + $0x1b8] sm:$0xff] }
  0x44   :  { %v1833_v23 = vpack.c.bf16 %v101_v22, %v99_v21 }
  0x45   :  { %1058 = vmatpush1.bf16.msra.mxu0 %v1759_v2  ;;  %1122 = vmatpush1.bf16.msra.mxu1 %v1759_v2 }
  0x46   :  { %1060 = vmatprep.subr.bf16.mxu0 %v1763_v3  ;;  %1124 = vmatprep.subr.bf16.mxu1 %v1763_v3 }
  0x49   :  { %1062 = vmatpush1.bf16.msra.mxu0 %v1767_v9  ;;  %1126 = vmatpush1.bf16.msra.mxu1 %v1767_v9 }
  0x4a   :  { %1064 = vmatprep.subr.bf16.mxu0 %v1771_v13  ;;  %1128 = vmatprep.subr.bf16.mxu1 %v1771_v13 }
  0x4d   :  { %1066 = vmatpush1.bf16.msra.mxu0 %v1775_v18  ;;  %1130 = vmatpush1.bf16.msra.mxu1 %v1775_v18 }
  0x4e   :  { %1068 = vmatprep.subr.bf16.mxu0 %v1779_v19  ;;  %1132 = vmatprep.subr.bf16.mxu1 %v1779_v19 }
  0x51   :  { %1070 = vmatpush1.bf16.msra.mxu0 %v1783_v24  ;;  %1134 = vmatpush1.bf16.msra.mxu1 %v1783_v24 }
  0x52   :  { %1072 = vmatprep.subr.bf16.mxu0 %v1787_v25  ;;  %1136 = vmatprep.subr.bf16.mxu1 %v1787_v25 }
  0x55   :  { %1074 = vmatpush1.bf16.msra.mxu0 %v1791_v29  ;;  %1138 = vmatpush1.bf16.msra.mxu1 %v1791_v29 }
  0x56   :  { %1076 = vmatprep.subr.bf16.mxu0 %v1817_v1  ;;  %1140 = vmatprep.subr.bf16.mxu1 %v1817_v1 }
  0x59   :  { %1078 = vmatpush1.bf16.msra.mxu0 %v1819_v7  ;;  %1142 = vmatpush1.bf16.msra.mxu1 %v1819_v7 }
  0x5a   :  { %1080 = vmatprep.subr.bf16.mxu0 %v1825_v15  ;;  %1144 = vmatprep.subr.bf16.mxu1 %v1825_v15 }
  0x5d   :  { %1082 = vmatpush1.bf16.msra.mxu0 %v1827_v20  ;;  %1146 = vmatpush1.bf16.msra.mxu1 %v1827_v20 }
  0x5e   :  { %1084 = vmatprep.subr.bf16.mxu0 %v1833_v23  ;;  %1148 = vmatprep.subr.bf16.mxu1 %v1833_v23 }
  0x61   :  { %1086 = vmatpush1.bf16.msra.mxu0 %v1835_v32  ;;  %1150 = vmatpush1.bf16.msra.mxu1 %v1835_v32 }
  0xcb   :  { %v129_v38 = vpop.xlane.xlu0 %128 }
  0xcc   :  { %v137_v39 = vrot.slane %v129_v38, %v1799_v35  ;;  %v1841_v38 = vpack.c.bf16 %v105_v34, %v103_v33 }
  0xce   :  { %v139_v40 = vsub.f32 %v1698_v11, %v137_v39  ;;  %v102_v39 = vld [vmem:[#allocation5 + $0x1c0] sm:$0xff]  ;;  %1088 = vmatprep.subr.bf16.mxu0 %v1841_v38  ;;  %1152 = vmatprep.subr.bf16.mxu1 %v1841_v38 }
  0xcf   :  { %v189_v41 = vpop.xlane.xlu0 %188 }
  0xd0   :  { %v140_v44 = vmul.f32 1.442695, %v139_v40  ;;  %v197_v45 = vrot.slane %v189_v41, %v1799_v35  ;;  %v104_v40 = vld [vmem:[#allocation5 + $0x1d0] sm:$0xff] }
  0xd1   :  { %v1843_v41 = vpack.c.bf16 %v104_v40, %v102_v39 }
  0xd2   :  { %1554 = vpow2.f32 %v140_v44  ;;  %v199_v46 = vsub.f32 %v1700_v12, %v197_v45  ;;  %v107_v44 = vld [vmem:[#allocation5 + $0x1e8] sm:$0xff]  ;;  %v109_v45 = vld [vmem:[#allocation5 + $0x1f8] sm:$0xff] }
  0xd3   :  { %1090 = vmatpush1.bf16.msra.mxu0 %v1843_v41  ;;  %1154 = vmatpush1.bf16.msra.mxu1 %v1843_v41 }
  0xd4   :  { %v200_v47 = vmul.f32 1.442695, %v199_v46  ;;  %v1849_v46 = vpack.c.bf16 %v109_v45, %v107_v44 }
  0xd6   :  { %1556 = vpow2.f32 %v200_v47  ;;  %v106_v47 = vld [vmem:[#allocation5 + $0x1e0] sm:$0xff]  ;;  %1092 = vmatprep.subr.bf16.mxu0 %v1849_v46  ;;  %1156 = vmatprep.subr.bf16.mxu1 %v1849_v46 }
  0xdc   :  { %v1805_v50 = vpop.eup %1554 }
  0xdd   :  { %v149_v5 = vrot.slane %v1805_v50, %v1696_v10 }
  0xdf   :  { %v150_v51 = vcombine.high %v149_v5, %v149_v5  ;;  %v153_v53 = vsel %vm124_vm0, %v149_v5, 0.0  ;;  %v108_v5 = vld [vmem:[#allocation5 + $0x1f0] sm:$0xff] }
  0xe0   :  { %v1809_v52 = vpop.eup %1556 }
  0xe1   :  { %v154_v11 = vsel %vm124_vm0, %v150_v51, 0.0  ;;  %v209_v56 = vrot.slane %v1809_v52, %v1696_v10  ;;  %v1851_v51 = vpack.c.bf16 %v108_v5, %v106_v47  ;;  %v819_v47 = vld [vmem:[#allocation2 + $0xc] sm:$0xf] }
  0xe2   :  { %v155_v57 = vadd.f32 %v154_v11, %v153_v53 }
  0xe3   :  { %v210_v58 = vcombine.high %v209_v56, %v209_v56  ;;  %v213_v12 = vsel %vm124_vm0, %v209_v56, 0.0  ;;  %1094 = vmatpush1.bf16.msra.mxu0 %v1851_v51  ;;  %1158 = vmatpush1.bf16.msra.mxu1 %v1851_v51 }
  0xe4   :  { %156 = vadd.xlane.f32.xlu1 %v155_v57  ;;  %1160 = vmatprep.subr.bf16.mxu0 %v1710_v26 }
  0xe5   :  { %v214_v59 = vsel %vm124_vm0, %v210_v58, 0.0  ;;  %1224 = vmatprep.subr.bf16.mxu1 %v1710_v26  ;;  %v231_v58 = vld [vmem:[#allocation2] sm:$0xf] }
  0xe6   :  { %v215_v62 = vadd.f32 %v214_v59, %v213_v12  ;;  %v441_v12 = vld [vmem:[#allocation2 + $0x4] sm:$0xf] }
  0xe8   :  { %216 = vadd.xlane.f32.xlu1 %v215_v62 }
 0x171   :  { %v157_v53 = vpop.xlane.xlu1 %156 }
 0x172   :  { %1558 = vrcp.f32 %v157_v53 }
 0x175   :  { %v217_v11 = vpop.xlane.xlu1 %216 }
 0x176   :  { %1560 = vrcp.f32 %v217_v11 }
 0x17c   :  { %v1559_v56 = vpop.eup %1558 }
 0x17d   :  { %v166_v57 = vrot.slane %v1559_v56, %v1799_v35 }
 0x17f   :  { %v1861_v59 = vmul.f32 %v1805_v50, %v166_v57 }
 0x180   :  { %v1561_v62 = vpop.eup %1560 }
 0x181   :  { %v226_v63 = vrot.slane %v1561_v62, %v1799_v35  ;;  %v232_v0 = vmul.f32 %v231_v58, %v1861_v59  ;;  %v442_v4 = vmul.f32 %v441_v12, %v1861_v59  ;;  %v631_v33 = vmul.f32 %v630_v28, %v1861_v59 }
 0x182   :  { %v820_v5 = vmul.f32 %v819_v47, %v1861_v59 }
 0x183   :  { %v240_v6 = vrot.slane %v232_v0, %v1696_v10  ;;  %v1868_v8 = vrot.slane %v442_v4, %v1696_v10  ;;  %v1871_v14 = vmul.f32 %v1809_v52, %v226_v63  ;;  %v1943_v34 = vrot.slane %v631_v33, %v1696_v10 }
 0x184   :  { %v2021_v53 = vrot.slane %v820_v5, %v1696_v10 }
 0x185   :  { %v241_v16 = vcombine.high %v240_v6, %v240_v6  ;;  %v330_v17 = vmul.f32 %v231_v58, %v1871_v14  ;;  %v529_v50 = vmul.f32 %v441_v12, %v1871_v14  ;;  %v451_v35 = vcombine.high %v1868_v8, %v1868_v8 }
 0x186   :  { %v718_v39 = vmul.f32 %v630_v28, %v1871_v14  ;;  %v640_v40 = vcombine.high %v1943_v34, %v1943_v34  ;;  %v907_v11 = vmul.f32 %v819_v47, %v1871_v14  ;;  %v829_v56 = vcombine.high %v2021_v53, %v2021_v53 }
 0x187   :  { %308 = vmatprep.mubr.f32.mxu0 %v241_v16  ;;  %v338_v21 = vrot.slane %v330_v17, %v1696_v10  ;;  %v1879_v22 = vrot.slane %v529_v50, %v1696_v10 }
 0x188   :  { %309 = vmatmul.mubr.f32.vlgmr.msra.gmra.mrb[0].mxu0 %v240_v6  ;;  %v1954_v44 = vrot.slane %v718_v39, %v1696_v10  ;;  %v2032_v57 = vrot.slane %v907_v11, %v1696_v10  ;;  %v1025_v10 = vld.sshfl [vmem:[#allocation2 + $0x18] sm:$0x33 pattern:$0x76325410] }
 0x189   :  { %1162 = vmatpush1.bf16.msra.mxu0 %v1712_v30  ;;  %518 = vmatprep.mubr.f32.mxu0 %v451_v35  ;;  %v339_v52 = vcombine.high %v338_v21, %v338_v21  ;;  %v538_v27 = vcombine.high %v1879_v22, %v1879_v22 }
 0x18a   :  { %1164 = vmatprep.subr.bf16.mxu0 %v1714_v31  ;;  %v727_v45 = vcombine.high %v1954_v44, %v1954_v44  ;;  %v916_v58 = vcombine.high %v2032_v57, %v2032_v57 }
 0x18b   :  { %406 = vmatprep.mubr.f32.mxu1 %v339_v52 }
 0x18c   :  { %407 = vmatmul.mubr.f32.vlgmr.msra.gmra.mrb[0].mxu1 %v338_v21 }
 0x18d   :  { %1166 = vmatpush1.bf16.msra.mxu0 %v1719_v36  ;;  %1226 = vmatpush1.bf16.msra.mxu1 %v1712_v30 }
 0x18e   :  { %605 = vmatprep.mubr.f32.mxu1 %v538_v27  ;;  %1168 = vmatprep.subr.bf16.mxu0 %v1723_v37 }
 0x18f   :  { %1228 = vmatprep.subr.bf16.mxu1 %v1714_v31 }
 0x191   :  { %1170 = vmatpush1.bf16.msra.mxu0 %v1727_v42  ;;  %1230 = vmatpush1.bf16.msra.mxu1 %v1719_v36 }
 0x192   :  { %1172 = vmatprep.subr.bf16.mxu0 %v1731_v43  ;;  %1232 = vmatprep.subr.bf16.mxu1 %v1723_v37 }
 0x195   :  { %1174 = vmatpush1.bf16.msra.mxu0 %v1735_v48  ;;  %1234 = vmatpush1.bf16.msra.mxu1 %v1727_v42 }
 0x196   :  { %1176 = vmatprep.subr.bf16.mxu0 %v1739_v49  ;;  %1236 = vmatprep.subr.bf16.mxu1 %v1731_v43 }
 0x199   :  { %1178 = vmatpush1.bf16.msra.mxu0 %v1743_v54  ;;  %1238 = vmatpush1.bf16.msra.mxu1 %v1735_v48 }
 0x19a   :  { %1180 = vmatprep.subr.bf16.mxu0 %v1747_v55  ;;  %1240 = vmatprep.subr.bf16.mxu1 %v1739_v49 }
 0x19d   :  { %1182 = vmatpush1.bf16.msra.mxu0 %v1751_v60  ;;  %1242 = vmatpush1.bf16.msra.mxu1 %v1743_v54 }
 0x19e   :  { %1184 = vmatprep.subr.bf16.mxu0 %v1755_v61  ;;  %1244 = vmatprep.subr.bf16.mxu1 %v1747_v55 }
 0x1a1   :  { %1186 = vmatpush1.bf16.msra.mxu0 %v1759_v2  ;;  %1246 = vmatpush1.bf16.msra.mxu1 %v1751_v60 }
 0x1a2   :  { %1188 = vmatprep.subr.bf16.mxu0 %v1763_v3  ;;  %1248 = vmatprep.subr.bf16.mxu1 %v1755_v61 }
 0x1a5   :  { %1190 = vmatpush1.bf16.msra.mxu0 %v1767_v9  ;;  %1250 = vmatpush1.bf16.msra.mxu1 %v1759_v2 }
 0x1a6   :  { %1192 = vmatprep.subr.bf16.mxu0 %v1771_v13  ;;  %1252 = vmatprep.subr.bf16.mxu1 %v1763_v3 }
 0x1a9   :  { %1194 = vmatpush1.bf16.msra.mxu0 %v1775_v18  ;;  %1254 = vmatpush1.bf16.msra.mxu1 %v1767_v9 }
 0x1aa   :  { %1196 = vmatprep.subr.bf16.mxu0 %v1779_v19  ;;  %1256 = vmatprep.subr.bf16.mxu1 %v1771_v13 }
 0x1ad   :  { %1198 = vmatpush1.bf16.msra.mxu0 %v1783_v24  ;;  %1258 = vmatpush1.bf16.msra.mxu1 %v1775_v18 }
 0x1ae   :  { %1200 = vmatprep.subr.bf16.mxu0 %v1787_v25  ;;  %1260 = vmatprep.subr.bf16.mxu1 %v1779_v19 }
 0x1b1   :  { %1202 = vmatpush1.bf16.msra.mxu0 %v1791_v29  ;;  %1262 = vmatpush1.bf16.msra.mxu1 %v1783_v24 }
 0x1b2   :  { %1204 = vmatprep.subr.bf16.mxu0 %v1817_v1  ;;  %1264 = vmatprep.subr.bf16.mxu1 %v1787_v25 }
 0x1b5   :  { %1206 = vmatpush1.bf16.msra.mxu0 %v1819_v7  ;;  %1266 = vmatpush1.bf16.msra.mxu1 %v1791_v29 }
 0x1b6   :  { %1208 = vmatprep.subr.bf16.mxu0 %v1825_v15  ;;  %1268 = vmatprep.subr.bf16.mxu1 %v1817_v1 }
 0x1b9   :  { %1210 = vmatpush1.bf16.msra.mxu0 %v1827_v20  ;;  %1270 = vmatpush1.bf16.msra.mxu1 %v1819_v7 }
 0x1ba   :  { %1212 = vmatprep.subr.bf16.mxu0 %v1833_v23  ;;  %1272 = vmatprep.subr.bf16.mxu1 %v1825_v15 }
 0x1bd   :  { %1214 = vmatpush1.bf16.msra.mxu0 %v1835_v32  ;;  %1274 = vmatpush1.bf16.msra.mxu1 %v1827_v20 }
 0x1be   :  { %1216 = vmatprep.subr.bf16.mxu0 %v1841_v38  ;;  %1276 = vmatprep.subr.bf16.mxu1 %v1833_v23 }
 0x1c1   :  { %1218 = vmatpush1.bf16.msra.mxu0 %v1843_v41  ;;  %1278 = vmatpush1.bf16.msra.mxu1 %v1835_v32 }
 0x1c2   :  { %1220 = vmatprep.subr.bf16.mxu0 %v1849_v46  ;;  %1280 = vmatprep.subr.bf16.mxu1 %v1841_v38 }
 0x1c5   :  { %1222 = vmatpush1.bf16.msra.mxu0 %v1851_v51  ;;  %1282 = vmatpush1.bf16.msra.mxu1 %v1843_v41 }
 0x1c6   :  { %1284 = vmatprep.subr.bf16.mxu1 %v1849_v46  ;;  %1288 = vmatprep.subr.bf16.mxu0 %v1710_v26 }
 0x1c8   :  { %519 = vmatmul.mubr.f32.vlgmr.msra.gmra.mrb[2].mxu0 %v1868_v8 }
 0x1c9   :  { %1286 = vmatpush1.bf16.msra.mxu1 %v1851_v51  ;;  %1290 = vmatpush1.bf16.msra.mxu0 %v1712_v30 }
 0x1ca   :  { %707 = vmatprep.mubr.f32.mxu0 %v640_v40  ;;  %1292 = vmatprep.subr.bf16.mxu0 %v1714_v31 }
 0x1cb   :  { %1352 = vmatprep.subr.bf16.mxu1 %v1710_v26 }
 0x1cc   :  { %606 = vmatmul.mubr.f32.vlgmr.msra.gmra.mrb[2].mxu1 %v1879_v22 }
 0x1cd   :  { %1294 = vmatpush1.bf16.msra.mxu0 %v1719_v36  ;;  %1354 = vmatpush1.bf16.msra.mxu1 %v1712_v30 }
 0x1ce   :  { %794 = vmatprep.mubr.f32.mxu1 %v727_v45  ;;  %1296 = vmatprep.subr.bf16.mxu0 %v1723_v37 }
 0x1cf   :  { %1356 = vmatprep.subr.bf16.mxu1 %v1714_v31 }
 0x1d1   :  { %1298 = vmatpush1.bf16.msra.mxu0 %v1727_v42  ;;  %1358 = vmatpush1.bf16.msra.mxu1 %v1719_v36 }
 0x1d2   :  { %1300 = vmatprep.subr.bf16.mxu0 %v1731_v43  ;;  %1360 = vmatprep.subr.bf16.mxu1 %v1723_v37 }
 0x1d5   :  { %1302 = vmatpush1.bf16.msra.mxu0 %v1735_v48  ;;  %1362 = vmatpush1.bf16.msra.mxu1 %v1727_v42 }
 0x1d6   :  { %1304 = vmatprep.subr.bf16.mxu0 %v1739_v49  ;;  %1364 = vmatprep.subr.bf16.mxu1 %v1731_v43 }
 0x1d9   :  { %1306 = vmatpush1.bf16.msra.mxu0 %v1743_v54  ;;  %1366 = vmatpush1.bf16.msra.mxu1 %v1735_v48 }
 0x1da   :  { %1308 = vmatprep.subr.bf16.mxu0 %v1747_v55  ;;  %1368 = vmatprep.subr.bf16.mxu1 %v1739_v49 }
 0x1dd   :  { %1310 = vmatpush1.bf16.msra.mxu0 %v1751_v60  ;;  %1370 = vmatpush1.bf16.msra.mxu1 %v1743_v54 }
 0x1de   :  { %1312 = vmatprep.subr.bf16.mxu0 %v1755_v61  ;;  %1372 = vmatprep.subr.bf16.mxu1 %v1747_v55 }
 0x1e1   :  { %1314 = vmatpush1.bf16.msra.mxu0 %v1759_v2  ;;  %1374 = vmatpush1.bf16.msra.mxu1 %v1751_v60 }
 0x1e2   :  { %1316 = vmatprep.subr.bf16.mxu0 %v1763_v3  ;;  %1376 = vmatprep.subr.bf16.mxu1 %v1755_v61 }
 0x1e5   :  { %1318 = vmatpush1.bf16.msra.mxu0 %v1767_v9  ;;  %1378 = vmatpush1.bf16.msra.mxu1 %v1759_v2 }
 0x1e6   :  { %1320 = vmatprep.subr.bf16.mxu0 %v1771_v13  ;;  %1380 = vmatprep.subr.bf16.mxu1 %v1763_v3 }
 0x1e9   :  { %1322 = vmatpush1.bf16.msra.mxu0 %v1775_v18  ;;  %1382 = vmatpush1.bf16.msra.mxu1 %v1767_v9 }
 0x1ea   :  { %1324 = vmatprep.subr.bf16.mxu0 %v1779_v19  ;;  %1384 = vmatprep.subr.bf16.mxu1 %v1771_v13 }
 0x1ed   :  { %1326 = vmatpush1.bf16.msra.mxu0 %v1783_v24  ;;  %1386 = vmatpush1.bf16.msra.mxu1 %v1775_v18 }
 0x1ee   :  { %1328 = vmatprep.subr.bf16.mxu0 %v1787_v25  ;;  %1388 = vmatprep.subr.bf16.mxu1 %v1779_v19 }
 0x1f1   :  { %1330 = vmatpush1.bf16.msra.mxu0 %v1791_v29  ;;  %1390 = vmatpush1.bf16.msra.mxu1 %v1783_v24 }
 0x1f2   :  { %1332 = vmatprep.subr.bf16.mxu0 %v1817_v1  ;;  %1392 = vmatprep.subr.bf16.mxu1 %v1787_v25 }
 0x1f5   :  { %1334 = vmatpush1.bf16.msra.mxu0 %v1819_v7  ;;  %1394 = vmatpush1.bf16.msra.mxu1 %v1791_v29 }
 0x1f6   :  { %1336 = vmatprep.subr.bf16.mxu0 %v1825_v15  ;;  %1396 = vmatprep.subr.bf16.mxu1 %v1817_v1 }
 0x1f9   :  { %1338 = vmatpush1.bf16.msra.mxu0 %v1827_v20  ;;  %1398 = vmatpush1.bf16.msra.mxu1 %v1819_v7 }
 0x1fa   :  { %1340 = vmatprep.subr.bf16.mxu0 %v1833_v23  ;;  %1400 = vmatprep.subr.bf16.mxu1 %v1825_v15 }
 0x1fd   :  { %1342 = vmatpush1.bf16.msra.mxu0 %v1835_v32  ;;  %1402 = vmatpush1.bf16.msra.mxu1 %v1827_v20 }
 0x1fe   :  { %1344 = vmatprep.subr.bf16.mxu0 %v1841_v38  ;;  %1404 = vmatprep.subr.bf16.mxu1 %v1833_v23 }
 0x201   :  { %1346 = vmatpush1.bf16.msra.mxu0 %v1843_v41  ;;  %1406 = vmatpush1.bf16.msra.mxu1 %v1835_v32 }
 0x202   :  { %1348 = vmatprep.subr.bf16.mxu0 %v1849_v46  ;;  %1408 = vmatprep.subr.bf16.mxu1 %v1841_v38 }
 0x205   :  { %1350 = vmatpush1.bf16.msra.mxu0 %v1851_v51  ;;  %1410 = vmatpush1.bf16.msra.mxu1 %v1843_v41 }
 0x206   :  { %1412 = vmatprep.subr.bf16.mxu1 %v1849_v46  ;;  %1416 = vmatprep.subr.bf16.mxu0 %v1710_v26 }
 0x208   :  { %708 = vmatmul.mubr.f32.vlgmr.msra.gmra.mrb[4].mxu0 %v1943_v34 }
 0x209   :  { %1414 = vmatpush1.bf16.msra.mxu1 %v1851_v51  ;;  %1418 = vmatpush1.bf16.msra.mxu0 %v1712_v30 }
 0x20a   :  { %896 = vmatprep.mubr.f32.mxu0 %v829_v56  ;;  %1420 = vmatprep.subr.bf16.mxu0 %v1714_v31 }
 0x20b   :  { %1480 = vmatprep.subr.bf16.mxu1 %v1710_v26  ;;  %v1026_v26 = vld.sshfl [vmem:[#allocation2 + $0x1c] sm:$0x33 pattern:$0x76325410] }
 0x20c   :  { %795 = vmatmul.mubr.f32.vlgmr.msra.gmra.mrb[4].mxu1 %v1954_v44 }
 0x20d   :  { %1422 = vmatpush1.bf16.msra.mxu0 %v1719_v36  ;;  %1482 = vmatpush1.bf16.msra.mxu1 %v1712_v30 }
 0x20e   :  { %983 = vmatprep.mubr.f32.mxu1 %v916_v58  ;;  %1424 = vmatprep.subr.bf16.mxu0 %v1723_v37 }
 0x20f   :  { %1484 = vmatprep.subr.bf16.mxu1 %v1714_v31 }
 0x211   :  { %1426 = vmatpush1.bf16.msra.mxu0 %v1727_v42  ;;  %1486 = vmatpush1.bf16.msra.mxu1 %v1719_v36  ;;  %v323_v36 = vcombine.high %v1025_v10, %v1025_v10 }
 0x212   :  { %1428 = vmatprep.subr.bf16.mxu0 %v1731_v43  ;;  %1488 = vmatprep.subr.bf16.mxu1 %v1723_v37  ;;  %v421_v37 = vcombine.high %v1026_v26, %v1026_v26 }
 0x215   :  { %1430 = vmatpush1.bf16.msra.mxu0 %v1735_v48  ;;  %1490 = vmatpush1.bf16.msra.mxu1 %v1727_v42 }
 0x216   :  { %1432 = vmatprep.subr.bf16.mxu0 %v1739_v49  ;;  %1492 = vmatprep.subr.bf16.mxu1 %v1731_v43 }
 0x219   :  { %1434 = vmatpush1.bf16.msra.mxu0 %v1743_v54  ;;  %1494 = vmatpush1.bf16.msra.mxu1 %v1735_v48 }
 0x21a   :  { %1436 = vmatprep.subr.bf16.mxu0 %v1747_v55  ;;  %1496 = vmatprep.subr.bf16.mxu1 %v1739_v49 }
 0x21d   :  { %1438 = vmatpush1.bf16.msra.mxu0 %v1751_v60  ;;  %1498 = vmatpush1.bf16.msra.mxu1 %v1743_v54 }
 0x21e   :  { %1440 = vmatprep.subr.bf16.mxu0 %v1755_v61  ;;  %1500 = vmatprep.subr.bf16.mxu1 %v1747_v55 }
 0x221   :  { %1442 = vmatpush1.bf16.msra.mxu0 %v1759_v2  ;;  %1502 = vmatpush1.bf16.msra.mxu1 %v1751_v60 }
 0x222   :  { %1444 = vmatprep.subr.bf16.mxu0 %v1763_v3  ;;  %1504 = vmatprep.subr.bf16.mxu1 %v1755_v61 }
 0x225   :  { %1446 = vmatpush1.bf16.msra.mxu0 %v1767_v9  ;;  %1506 = vmatpush1.bf16.msra.mxu1 %v1759_v2 }
 0x226   :  { %1448 = vmatprep.subr.bf16.mxu0 %v1771_v13  ;;  %1508 = vmatprep.subr.bf16.mxu1 %v1763_v3 }
 0x229   :  { %1450 = vmatpush1.bf16.msra.mxu0 %v1775_v18  ;;  %1510 = vmatpush1.bf16.msra.mxu1 %v1767_v9 }
 0x22a   :  { %1452 = vmatprep.subr.bf16.mxu0 %v1779_v19  ;;  %1512 = vmatprep.subr.bf16.mxu1 %v1771_v13 }
 0x22d   :  { %1454 = vmatpush1.bf16.msra.mxu0 %v1783_v24  ;;  %1514 = vmatpush1.bf16.msra.mxu1 %v1775_v18 }
 0x22e   :  { %1456 = vmatprep.subr.bf16.mxu0 %v1787_v25  ;;  %1516 = vmatprep.subr.bf16.mxu1 %v1779_v19 }
 0x231   :  { %1458 = vmatpush1.bf16.msra.mxu0 %v1791_v29  ;;  %1518 = vmatpush1.bf16.msra.mxu1 %v1783_v24 }
 0x232   :  { %1460 = vmatprep.subr.bf16.mxu0 %v1817_v1  ;;  %1520 = vmatprep.subr.bf16.mxu1 %v1787_v25 }
 0x235   :  { %1462 = vmatpush1.bf16.msra.mxu0 %v1819_v7  ;;  %1522 = vmatpush1.bf16.msra.mxu1 %v1791_v29 }
 0x236   :  { %1464 = vmatprep.subr.bf16.mxu0 %v1825_v15  ;;  %1524 = vmatprep.subr.bf16.mxu1 %v1817_v1 }
 0x239   :  { %1466 = vmatpush1.bf16.msra.mxu0 %v1827_v20  ;;  %1526 = vmatpush1.bf16.msra.mxu1 %v1819_v7 }
 0x23a   :  { %1468 = vmatprep.subr.bf16.mxu0 %v1833_v23  ;;  %1528 = vmatprep.subr.bf16.mxu1 %v1825_v15 }
 0x23d   :  { %1470 = vmatpush1.bf16.msra.mxu0 %v1835_v32  ;;  %1530 = vmatpush1.bf16.msra.mxu1 %v1827_v20 }
 0x23e   :  { %1472 = vmatprep.subr.bf16.mxu0 %v1841_v38  ;;  %1532 = vmatprep.subr.bf16.mxu1 %v1833_v23 }
 0x241   :  { %1474 = vmatpush1.bf16.msra.mxu0 %v1843_v41  ;;  %1534 = vmatpush1.bf16.msra.mxu1 %v1835_v32 }
 0x242   :  { %1476 = vmatprep.subr.bf16.mxu0 %v1849_v46  ;;  %1536 = vmatprep.subr.bf16.mxu1 %v1841_v38 }
 0x245   :  { %1478 = vmatpush1.bf16.msra.mxu0 %v1851_v51  ;;  %1538 = vmatpush1.bf16.msra.mxu1 %v1843_v41 }
 0x246   :  { %1540 = vmatprep.subr.bf16.mxu1 %v1849_v46 }
 0x248   :  { %897 = vmatmul.mubr.f32.vlgmr.msra.gmra.mrb[6].mxu0 %v2021_v53 }
 0x249   :  { %1542 = vmatpush1.bf16.msra.mxu1 %v1851_v51 }
 0x24c   :  { %984 = vmatmul.mubr.f32.vlgmr.msra.gmra.mrb[6].mxu1 %v2032_v57 }
 0x25b   :  { %v310_v30 = vpop.f32.mrb[0].mxu0 }
 0x25c   :  { %v312_v31 = vpop.f32.mrb[1].mxu0  ;;  %v326_v43 = vmul.f32 %v1025_v10, %v310_v30 }
 0x25d   :  { %v327_v54 = vmul.f32 %v323_v36, %v312_v31 }
 0x25f   :  { %v408_v42 = vpop.f32.mrb[0].mxu1 }
 0x260   :  { %v424_v48 = vmul.f32 %v1026_v26, %v408_v42  ;;  %v410_v49 = vpop.f32.mrb[1].mxu1 }
 0x261   :  { %v425_v55 = vmul.f32 %v421_v37, %v410_v49 }
 0x262   :  { %v426_v60 = vadd.f32 %v424_v48, %v326_v43 }
 0x263   :  { %v427_v61 = vadd.f32 %v425_v55, %v327_v54 }
 0x265   :  { %v430_v2 = vcombine.low %v426_v60, %v427_v61 }
 0x267   :  { %1027 = vst.sshfl [vmem:[#allocation7] sm:$0x33 pattern:$0x76325410] %v430_v2 }
 0x29b   :  { %v520_v3 = vpop.f32.mrb[2].mxu0 }
 0x29c   :  { %v522_v9 = vpop.f32.mrb[3].mxu0  ;;  %v525_v18 = vmul.f32 %v1025_v10, %v520_v3 }
 0x29d   :  { %v526_v25 = vmul.f32 %v522_v9, %v323_v36 }
 0x29f   :  { %v607_v13 = vpop.f32.mrb[2].mxu1 }
 0x2a0   :  { %v612_v19 = vmul.f32 %v1026_v26, %v607_v13  ;;  %v609_v24 = vpop.f32.mrb[3].mxu1 }
 0x2a1   :  { %v613_v29 = vmul.f32 %v609_v24, %v421_v37 }
 0x2a2   :  { %v614_v1 = vadd.f32 %v612_v19, %v525_v18 }
 0x2a3   :  { %v615_v7 = vadd.f32 %v613_v29, %v526_v25 }
 0x2a5   :  { %v618_v15 = vcombine.low %v614_v1, %v615_v7 }
 0x2a7   :  { %1028 = vst.sshfl [vmem:[#allocation7 + $0x4] sm:$0x33 pattern:$0x76325410] %v618_v15 }
 0x2db   :  { %v709_v20 = vpop.f32.mrb[4].mxu0 }
 0x2dc   :  { %v711_v23 = vpop.f32.mrb[5].mxu0  ;;  %v714_v38 = vmul.f32 %v1025_v10, %v709_v20 }
 0x2dd   :  { %v715_v51 = vmul.f32 %v711_v23, %v323_v36 }
 0x2df   :  { %v796_v32 = vpop.f32.mrb[4].mxu1 }
 0x2e0   :  { %v801_v41 = vmul.f32 %v1026_v26, %v796_v32  ;;  %v798_v46 = vpop.f32.mrb[5].mxu1 }
 0x2e1   :  { %v802_v12 = vmul.f32 %v798_v46, %v421_v37 }
 0x2e2   :  { %v803_v59 = vadd.f32 %v801_v41, %v714_v38 }
 0x2e3   :  { %v804_v62 = vadd.f32 %v802_v12, %v715_v51 }
 0x2e5   :  { %v807_v63 = vcombine.low %v803_v59, %v804_v62 }
 0x2e7   :  { %1029 = vst.sshfl [vmem:[#allocation7 + $0x8] sm:$0x33 pattern:$0x76325410] %v807_v63 }
 0x31b   :  { %v898_v0 = vpop.f32.mrb[6].mxu0 }
 0x31c   :  { %v900_v4 = vpop.f32.mrb[7].mxu0  ;;  %v903_v8 = vmul.f32 %v1025_v10, %v898_v0 }
 0x31d   :  { %v904_v17 = vmul.f32 %v900_v4, %v323_v36 }
 0x31f   :  { %v985_v6 = vpop.f32.mrb[6].mxu1 }
 0x320   :  { %v990_v14 = vmul.f32 %v1026_v26, %v985_v6  ;;  %v987_v16 = vpop.f32.mrb[7].mxu1 }
 0x321   :  { %v991_v50 = vmul.f32 %v987_v16, %v421_v37 }
 0x322   :  { %v992_v35 = vadd.f32 %v990_v14, %v903_v8 }
 0x323   :  { %v993_v21 = vadd.f32 %v991_v50, %v904_v17 }
 0x325   :  { %v996_v22 = vcombine.low %v992_v35, %v993_v21 }
 0x327   :  { %1030 = vst.sshfl [vmem:[#allocation7 + $0xc] sm:$0x33 pattern:$0x76325410] %v996_v22 }
 0x328   :  { %1617 = shalt.err (!%p1614_p6)
}
 0x329   :  { %s1618_s17 = scalar_lea.hbm %s2121_s3, 256 }
 0x32a   :  { %p1619_p7 = scmp.ne.s32.totalorder %s2121_s3, %s1618_s17  ;;  %p1622_p8 = scmp.lt.u32.totalorder %s1618_s17, %s2121_s3 }
 0x32c   :  { %p1624_p9 = pnand %p1622_p8, %p1619_p7 }
 0x32e   :  { %1627 = shalt.err (!%p1624_p9)
}
 0x32f   :  { %1018 = dma.vmem_to_hbm [thread:$0]  %s1013_s2, 256, %s2121_s3, [#allocation4], %s1635_s22, %s1635_s22, %s1636_s23  }
 0x330   :  { %1632 = dma.done.wait [#allocation4], 256  }
 0x331   :  { %1633 = vsyncadd [#allocation4], 4294967040 }
 0x332   :  { %1022 = vsyncpa [#allocation3], 1 }
 0x333   :  { %1023 = vsyncpa [#allocation6], 1 }
 0x334   :  { %1024 = vsyncpa [#allocation4], 1 }

</bundles_post_ra>
